<compile_context>
chip_gen: v7x
topology: tpu7x:2x2x1
jax: 0.10.0
libtpu: 0.0.40
codegen_flags: <defaults>
</compile_context>

<pallas_src>
import functools

import jax
import jax.numpy as jnp
from jax.experimental import pallas as pl
from jax.experimental.pallas import tpu as pltpu


def _physical_vmem_bytes():
    try:
        return int(pltpu.get_tpu_info().vmem_capacity_bytes)
    except Exception:
        return 64 * 1024 * 1024      # conservative default: v7x per-TC VMEM


def _round_up(x, m):
    return (x + m - 1) // m * m


def _soft_xent_rows(x, t):
    """Per-sample soft cross entropy for one (TN, C) f32 tile -> (TN, 1).

    sum_c t * (-log_softmax(x)) = sum_c t * (lse(x) - x)
    Single pass over the targets tile; better conditioned than
    lse*sum(t) - sum(t*x) when |x| is large.
    """
    m = jnp.max(x, axis=-1, keepdims=True)                               # (TN, 1)
    lse = m + jnp.log(jnp.sum(jnp.exp(x - m), axis=-1, keepdims=True))   # (TN, 1)
    return jnp.sum(t * (lse - x), axis=-1, keepdims=True)                # (TN, 1)


def _masked_row_losses(logits_ref, targets_ref, n_rows):
    """Load this block, mask rows >= n_rows, return (TN, 1) per-row losses."""
    tn = logits_ref.shape[0]
    x = logits_ref[...].astype(jnp.float32)
    t = targets_ref[...].astype(jnp.float32)
    row = pl.program_id(0) * tn + jax.lax.broadcasted_iota(jnp.int32, (tn, 1), 0)
    valid = row < n_rows                                                 # (TN, 1)
    # Mask the logits too: the ragged last block's out-of-bounds DMA region is
    # uninitialized and may hold Inf/NaN; keep all row-local math finite.
    x = jnp.where(valid, x, 0.0)
    loss = _soft_xent_rows(x, t)
    return jnp.where(valid, loss, 0.0)                                   # (TN, 1)


def _per_sample_kernel(logits_ref, targets_ref, out_ref, *, n_rows):
    """reduce=False: write per-sample losses for this (TN, C) block."""
    out_ref[...] = _masked_row_losses(logits_ref, targets_ref, n_rows)


def _partial_sum_kernel(logits_ref, targets_ref, out_ref, *, n_rows):
    """reduce=True: each block writes its own partial sum (no carried state)."""
    loss = _masked_row_losses(logits_ref, targets_ref, n_rows)           # (TN, 1)
    blk = jnp.sum(loss, axis=0, keepdims=True)                           # (1, 1)
    # One (8,128) tile per block; the wrapper picks [0,0] of each block.
    out_ref[...] = jnp.broadcast_to(blk, (8, 128))


def soft_cross_entropy(inputs, targets, reduce=True, block_rows=None):
    """JAX wrapper matching softCrossEntropy.forward.

    inputs:  (N, C) predictions (logits), f32 or bf16
    targets: (N, C) soft target labels
    """
    n, c = targets.shape
    in_itemsize = max(jnp.dtype(inputs.dtype).itemsize,
                      jnp.dtype(targets.dtype).itemsize)

    phys_vmem = _physical_vmem_bytes()
    vmem_budget = int(phys_vmem * 0.45)       # 2 inputs x 2 buffers + f32 temps
    vmem_limit = int(phys_vmem * 0.80)

    mult = 8 if in_itemsize >= 4 else 16      # bf16 packs 16 rows / vreg
    # VMEM bytes per block row: 2 inputs x 2 pipeline buffers at the HBM dtype
    # plus ~3 full-width f32 temporaries materialized in-kernel.
    per_row = c * (4 * in_itemsize + 3 * 4)
    tn = (vmem_budget // per_row) // mult * mult
    tn = min(tn, 64 * 1024)                   # bound single-step latency
    tn = min(tn, _round_up(n, mult))
    if block_rows is not None:                # explicit override (tests / tuning)
        tn = min(_round_up(max(block_rows, mult), mult), _round_up(n, mult))

    if tn < mult:
        # Even the smallest legal block does not fit VMEM (very large C).
        # TODO(synk): add a C-tiled (online-softmax) Pallas path for huge class counts.
        log_p = jax.nn.log_softmax(inputs.astype(jnp.float32), axis=1)
        per = -jnp.sum(log_p * targets.astype(jnp.float32), axis=1)
        return jnp.sum(per) / n if reduce else per

    grid = (pl.cdiv(n, tn),)
    nblk = grid[0]
    in_specs = [
        pl.BlockSpec((tn, c), lambda i: (i, 0)),
        pl.BlockSpec((tn, c), lambda i: (i, 0)),
    ]
    cparams = pltpu.CompilerParams(
        dimension_semantics=("parallel",),    # no carried state: megacore-splittable
        vmem_limit_bytes=vmem_limit,
    )

    if reduce:
        out = pl.pallas_call(
            functools.partial(_partial_sum_kernel, n_rows=n),
            out_shape=jax.ShapeDtypeStruct((nblk * 8, 128), jnp.float32),
            grid_spec=pltpu.PrefetchScalarGridSpec(
                num_scalar_prefetch=0,
                grid=grid,
                in_specs=in_specs,
                out_specs=pl.BlockSpec((8, 128), lambda i: (i, 0)),
            ),
            compiler_params=cparams,
        )(inputs, targets)
        partials = out.reshape(nblk, 8, 128)[:, 0, 0]        # one value per block
        return jnp.sum(partials) / n                         # torch.sum(...) / N

    per_sample = pl.pallas_call(
        functools.partial(_per_sample_kernel, n_rows=n),
        out_shape=jax.ShapeDtypeStruct((n, 1), jnp.float32),
        grid_spec=pltpu.PrefetchScalarGridSpec(
            num_scalar_prefetch=0,
            grid=grid,
            in_specs=in_specs,
            out_specs=pl.BlockSpec((tn, 1), lambda i: (i, 0)),
        ),
        compiler_params=cparams,
    )(inputs, targets)
    # TODO(synk): lane-dense (1, TN) per-block output (avoids vst.msk partial
    # stores for small C) needs an in-kernel (TN,1)->(1,TN) relayout; kept as a
    # narrow column here for robust lowering.
    return per_sample[:, 0]


def _reference(inputs, targets, reduce=True):
    log_p = jax.nn.log_softmax(inputs.astype(jnp.float32), axis=1)
    per = -jnp.sum(log_p * targets.astype(jnp.float32), axis=1)
    return jnp.sum(per) / targets.shape[0] if reduce else per


if __name__ == "__main__":
    key = jax.random.PRNGKey(0)
    k1, k2, k3, k4, k5, k6 = jax.random.split(key, 6)

    # Small typical shape: 8 samples, 32 classes (single block).
    N, C = 8, 32
    logits = jax.random.normal(k1, (N, C), dtype=jnp.float32)
    targets = jax.nn.softmax(jax.random.normal(k2, (N, C), dtype=jnp.float32), axis=1)
    loss = jax.block_until_ready(soft_cross_entropy(logits, targets, reduce=True))
    loss_nr = jax.block_until_ready(soft_cross_entropy(logits, targets, reduce=False))
    assert jnp.allclose(loss, _reference(logits, targets, True), atol=1e-5, rtol=1e-5)
    assert jnp.allclose(loss_nr, _reference(logits, targets, False), atol=1e-5, rtol=1e-5)

    # Ragged batch (not a multiple of 8) -> exercises the in-kernel row mask.
    N2, C2 = 12, 40
    logits2 = jax.random.normal(k3, (N2, C2), dtype=jnp.float32)
    targets2 = jax.nn.softmax(jax.random.normal(k4, (N2, C2), dtype=jnp.float32), axis=1)
    assert jnp.allclose(
        jax.block_until_ready(soft_cross_entropy(logits2, targets2, True)),
        _reference(logits2, targets2, True), atol=1e-5, rtol=1e-5)
    assert jnp.allclose(
        jax.block_until_ready(soft_cross_entropy(logits2, targets2, False)),
        _reference(logits2, targets2, False), atol=1e-5, rtol=1e-5)

    # Multi-block grid with a ragged last block (forced small block_rows):
    # exercises the parallel per-block partial sums and the row mask together.
    N3, C3 = 20, 32
    logits3 = jax.random.normal(k5, (N3, C3), dtype=jnp.float32)
    targets3 = jax.nn.softmax(jax.random.normal(k6, (N3, C3), dtype=jnp.float32), axis=1)
    assert jnp.allclose(
        jax.block_until_ready(soft_cross_entropy(logits3, targets3, True, block_rows=8)),
        _reference(logits3, targets3, True), atol=1e-5, rtol=1e-5)
    assert jnp.allclose(
        jax.block_until_ready(soft_cross_entropy(logits3, targets3, False, block_rows=8)),
        _reference(logits3, targets3, False), atol=1e-5, rtol=1e-5)

    # bf16 inputs stay bf16 in HBM (half the bytes for this HBM-bound kernel),
    # cast to f32 inside the kernel; exercises the 16-row sublane granule.
    logits_bf = logits.astype(jnp.bfloat16)
    targets_bf = targets.astype(jnp.bfloat16)
    loss_bf = jax.block_until_ready(soft_cross_entropy(logits_bf, targets_bf, True))
    assert jnp.allclose(loss_bf, _reference(logits_bf, targets_bf, True),
                        atol=1e-3, rtol=1e-3)

    print("KERNEL_OK")
</pallas_src>

<mosaic_0001>
module attributes {stable_mosaic.version = 11 : i64} {
  func.func @_partial_sum_kernel(%arg0: i32, %arg1: memref<8x32xf32, #tpu.memory_space<vmem>>, %arg2: memref<8x32xf32, #tpu.memory_space<vmem>>, %arg3: memref<8x128xf32, #tpu.memory_space<vmem>>) attributes {dimension_semantics = [#tpu.dimension_semantics<parallel>], iteration_bounds = array<i64: 1>, scalar_prefetch = 0 : i64, scratch_operands = 0 : i64, tpu.core_type = #tpu.core_type<tc>, window_params = [{transform_indices = @transform_0, window_bounds = array<i64: 8, 32>}, {transform_indices = @transform_1, window_bounds = array<i64: 8, 32>}, {transform_indices = @transform_2, window_bounds = array<i64: 8, 128>}]} {
    %c0 = arith.constant 0 : index
    %c0_0 = arith.constant 0 : index
    %0 = vector.load %arg1[%c0, %c0_0] : memref<8x32xf32, #tpu.memory_space<vmem>>, vector<8x32xf32>
    %c0_1 = arith.constant 0 : index
    %c0_2 = arith.constant 0 : index
    %1 = vector.load %arg2[%c0_1, %c0_2] : memref<8x32xf32, #tpu.memory_space<vmem>>, vector<8x32xf32>
    %c8_i32 = arith.constant 8 : i32
    %2 = arith.muli %arg0, %c8_i32 : i32
    %3 = tpu.iota {dimensions = array<i32: 0>} : vector<8x1xi32>
    %4 = vector.broadcast %2 : i32 to vector<8x1xi32>
    %5 = arith.addi %4, %3 : vector<8x1xi32>
    %c8_i32_3 = arith.constant 8 : i32
    %6 = vector.broadcast %c8_i32_3 : i32 to vector<8x1xi32>
    %7 = arith.cmpi slt, %5, %6 : vector<8x1xi32>
    %cst = arith.constant 0.000000e+00 : f32
    %8 = vector.shape_cast %7 : vector<8x1xi1> to vector<8x1xi1>
    %9 = vector.broadcast %8 : vector<8x1xi1> to vector<8x32xi1>
    %10 = vector.broadcast %cst : f32 to vector<8x32xf32>
    %11 = arith.select %9, %0, %10 : vector<8x32xi1>, vector<8x32xf32>
    %cst_4 = arith.constant dense<0xFF800000> : vector<8xf32>
    %12 = vector.multi_reduction <maximumf>, %11, %cst_4 [1] : vector<8x32xf32> to vector<8xf32>
    %13 = vector.shape_cast %12 : vector<8xf32> to vector<8x1xf32>
    %14 = vector.broadcast %13 : vector<8x1xf32> to vector<8x32xf32>
    %15 = arith.subf %11, %14 : vector<8x32xf32>
    %16 = math.exp %15 : vector<8x32xf32>
    %cst_5 = arith.constant dense<0.000000e+00> : vector<8xf32>
    %17 = vector.multi_reduction <add>, %16, %cst_5 [1] : vector<8x32xf32> to vector<8xf32>
    %18 = vector.shape_cast %17 : vector<8xf32> to vector<8x1xf32>
    %19 = math.log %18 : vector<8x1xf32>
    %20 = arith.addf %13, %19 : vector<8x1xf32>
    %21 = vector.broadcast %20 : vector<8x1xf32> to vector<8x32xf32>
    %22 = arith.subf %21, %11 : vector<8x32xf32>
    %23 = arith.mulf %1, %22 : vector<8x32xf32>
    %cst_6 = arith.constant dense<0.000000e+00> : vector<8xf32>
    %24 = vector.multi_reduction <add>, %23, %cst_6 [1] : vector<8x32xf32> to vector<8xf32>
    %25 = vector.shape_cast %24 : vector<8xf32> to vector<8x1xf32>
    %cst_7 = arith.constant 0.000000e+00 : f32
    %26 = vector.broadcast %cst_7 : f32 to vector<8x1xf32>
    %27 = arith.select %7, %25, %26 : vector<8x1xi1>, vector<8x1xf32>
    %cst_8 = arith.constant dense<0.000000e+00> : vector<1xf32>
    %28 = vector.multi_reduction <add>, %27, %cst_8 [0] : vector<8x1xf32> to vector<1xf32>
    %29 = vector.shape_cast %28 : vector<1xf32> to vector<1x1xf32>
    %30 = vector.shape_cast %29 : vector<1x1xf32> to vector<1x1xf32>
    %31 = vector.broadcast %30 : vector<1x1xf32> to vector<8x128xf32>
    %c0_9 = arith.constant 0 : index
    %c0_10 = arith.constant 0 : index
    %32 = vector.load %arg3[%c0_9, %c0_10] : memref<8x128xf32, #tpu.memory_space<vmem>>, vector<8x128xf32>
    tpu.vector_store %arg3[%c0_9, %c0_10], %31 {strides = array<i32>} : memref<8x128xf32, #tpu.memory_space<vmem>>, vector<8x128xf32>,
    return
  }
  func.func @transform_0(%arg0: i32) -> (i32, i32) {
    %c0_i32 = arith.constant 0 : i32
    %c0_i32_0 = arith.constant 0 : i32
    return %arg0, %c0_i32 : i32, i32
  }
  func.func @transform_1(%arg0: i32) -> (i32, i32) {
    %c0_i32 = arith.constant 0 : i32
    %c0_i32_0 = arith.constant 0 : i32
    return %arg0, %c0_i32 : i32, i32
  }
  func.func @transform_2(%arg0: i32) -> (i32, i32) {
    %c0_i32 = arith.constant 0 : i32
    %c0_i32_0 = arith.constant 0 : i32
    return %arg0, %c0_i32 : i32, i32
  }
}

</mosaic_0001>

<bundles_post_ra>
// kernel: tpu_custom_call.1
= control target key start
LH: loop header
LB: loop body
LE: loop exit
PB: predicated region body
PF: predicated region fallthrough
CT: control target
= control target key end

     0   :  { %7 = vsyncpa [#allocation3], 0  ;;  %s225_s0 = inlined_call_operand.hbm [shape: f32[8,32], index: 0, kind: input, shape index: {}]   ;;  %s226_s1 = inlined_call_operand.hbm [shape: f32[8,32], index: 1, kind: input, shape index: {}]   ;;  %s227_s2 = inlined_call_operand.hbm [shape: f32[8,128], index: 2, kind: output, shape index: {}]  }
   0x1   :  { %8 = vsyncpa [#allocation6], 0 }
   0x2   :  { %9 = vsyncpa [#allocation4], 0  ;;  %s168_s9 = smov [#allocation2]   ;;  %s169_s11 = smov [#allocation5]  }
   0x3   :  { %s16_s10 = sshll.u32 %s168_s9, 4  ;;  %s26_s12 = sshll.u32 %s169_s11, 4  ;;  %s17_s10 = int_to_ptr.vmem [resolvable:$true] %s16_s10  ;;  %s27_s12 = int_to_ptr.vmem [resolvable:$true] %s26_s12 }
   0x4   :  { %s96_s15 = scalar_lea.hbm %s225_s0, 128 }
   0x5   :  { %p97_p0 = scmp.ne.s32.totalorder %s225_s0, %s96_s15  ;;  %p100_p1 = scmp.lt.u32.totalorder %s96_s15, %s225_s0 }
   0x7   :  { %p102_p2 = pnand %p100_p1, %p97_p0 }
   0x9   :  { %105 = shalt.err (!%p102_p2)
}
   0xa   :  { %s106_s20 = scalar_lea.vmem %s17_s10, 128  ;;  %p111_p4 = scmp.lt.s32.totalorder %s17_s10, %s17_s10 }
   0xb   :  { %p107_p3 = scmp.ne.s32.totalorder %s17_s10, %s106_s20  ;;  %p112_p5 = scmp.lt.s32.totalorder %s106_s20, %s106_s20 }
   0xd   :  { %p113_p6 = por %p112_p5, %p111_p4 }
   0xf   :  { %p114_p7 = pnand %p113_p6, %p107_p3 }
  0x11   :  { %117 = shalt.err (!%p114_p7)
}
  0x12   :  { %19 = dma.hbm_to_vmem [thread:$0]  %s225_s0, 128, %s17_s10, [#allocation3]  }
  0x13   :  { %s118_s25 = scalar_lea.hbm %s226_s1, 128 }
  0x14   :  { %p119_p8 = scmp.ne.s32.totalorder %s226_s1, %s118_s25  ;;  %p122_p9 = scmp.lt.u32.totalorder %s118_s25, %s226_s1 }
  0x16   :  { %p124_p10 = pnand %p122_p9, %p119_p8 }
  0x18   :  { %127 = shalt.err (!%p124_p10)
}
  0x19   :  { %s128_s30 = scalar_lea.vmem %s27_s12, 128  ;;  %p133_p12 = scmp.lt.s32.totalorder %s27_s12, %s27_s12 }
  0x1a   :  { %p129_p11 = scmp.ne.s32.totalorder %s27_s12, %s128_s30  ;;  %p134_p13 = scmp.lt.s32.totalorder %s128_s30, %s128_s30 }
  0x1c   :  { %p135_p0 = por %p134_p13, %p133_p12 }
  0x1e   :  { %p136_p1 = pnand %p135_p0, %p129_p11 }
  0x20   :  { %139 = shalt.err (!%p136_p1)
}
  0x21   :  { %29 = dma.hbm_to_vmem [thread:$0]  %s226_s1, 128, %s27_s12, [#allocation6]  }
  0x22   :  { %162 = dma.done.wait [#allocation3], 128  }
  0x23   :  { %163 = vsyncadd [#allocation3], 4294967168 }
  0x24   :  { %164 = dma.done.wait [#allocation6], 128  }
  0x25   :  { %165 = vsyncadd [#allocation6], 4294967168  ;;  %vm47_vm0 = vcmask 261120   ;;  %v36_v0 = vld [vmem:[#allocation2] sm:$0xff]  ;;  %v37_v11 = vld [vmem:[#allocation5] sm:$0xff]  ;;  %s170_s1 = smov [#allocation7]  }
  0x26   :  { %v48_v1 = vsel %vm47_vm0, %v36_v0, -inf  ;;  %s79_s4 = sshll.u32 %s170_s1, 4  ;;  %s80_s4 = int_to_ptr.vmem [resolvable:$true] %s79_s4 }
  0x27   :  { %49 = vmax.xlane.f32.xlu0 %v48_v1  ;;  %s140_s5 = scalar_lea.vmem %s80_s4, 128  ;;  %p145_p3 = scmp.lt.s32.totalorder %s80_s4, %s80_s4 }
  0x28   :  { %p141_p2 = scmp.ne.s32.totalorder %s80_s4, %s140_s5  ;;  %p146_p4 = scmp.lt.s32.totalorder %s140_s5, %s140_s5 }
  0x2a   :  { %p147_p5 = por %p146_p4, %p145_p3 }
  0x2c   :  { %p148_p6 = pnand %p147_p5, %p141_p2 }
  0xb4   :  { %v50_v2 = vpop.xlane.xlu0 %49 }
  0xb5   :  { %v51_v3 = vsub.f32 %v36_v0, %v50_v2 }
  0xb7   :  { %v52_v4 = vmul.f32 1.442695, %v51_v3 }
  0xb9   :  { %92 = vpow2.f32 %v52_v4 }
  0xc3   :  { %v93_v5 = vpop.eup %92 }
  0xc4   :  { %v54_v6 = vsel %vm47_vm0, %v93_v5, 0.0 }
  0xc5   :  { %55 = vadd.xlane.f32.xlu0 %v54_v6 }
 0x152   :  { %v56_v7 = vpop.xlane.xlu0 %55 }
 0x153   :  { %94 = vlog2.f32 %v56_v7 }
 0x15d   :  { %v95_v8 = vpop.eup %94 }
 0x15e   :  { %v58_v9 = vmul.f32 0.6931472, %v95_v8 }
 0x160   :  { %v59_v10 = vadd.f32 %v58_v9, %v50_v2 }
 0x162   :  { %v60_v12 = vsub.f32 %v59_v10, %v36_v0 }
 0x164   :  { %v61_v13 = vmul.f32 %v60_v12, %v37_v11 }
 0x166   :  { %v62_v14 = vsel %vm47_vm0, %v61_v13, 0.0 }
 0x167   :  { %63 = vadd.xlane.f32.xlu1 %v62_v14 }
 0x1f4   :  { %v64_v15 = vpop.xlane.xlu1 %63 }
 0x1f5   :  { %v66_v16 = vrot.slane %v64_v15, 4 }
 0x1f7   :  { %v67_v17 = vadd.f32 %v66_v16, %v64_v15 }
 0x1f9   :  { %v68_v18 = vrot.slane %v67_v17, 2 }
 0x1fb   :  { %v69_v19 = vadd.f32 %v68_v18, %v67_v17 }
 0x1fd   :  { %v70_v20 = vrot.slane %v69_v19, 1 }
 0x1ff   :  { %v71_v21 = vadd.f32 %v70_v20, %v69_v19 }
 0x201   :  { %72 = vst [vmem:[#allocation7] sm:$0xff] %v71_v21 }
 0x202   :  { %151 = shalt.err (!%p148_p6)
}
 0x203   :  { %s152_s8 = scalar_lea.hbm %s227_s2, 128 }
 0x204   :  { %p153_p7 = scmp.ne.s32.totalorder %s227_s2, %s152_s8  ;;  %p156_p8 = scmp.lt.u32.totalorder %s152_s8, %s227_s2 }
 0x206   :  { %p158_p9 = pnand %p156_p8, %p153_p7 }
 0x208   :  { %161 = shalt.err (!%p158_p9)
}
 0x209   :  { %82 = dma.vmem_to_hbm [thread:$0]  %s80_s4, 128, %s227_s2, [#allocation4]  }
 0x20a   :  { %166 = dma.done.wait [#allocation4], 128  }
 0x20b   :  { %167 = vsyncadd [#allocation4], 4294967168 }
 0x20c   :  { %86 = vsyncpa [#allocation3], 1 }
 0x20d   :  { %87 = vsyncpa [#allocation6], 1 }
 0x20e   :  { %88 = vsyncpa [#allocation4], 1 }

</bundles_post_ra>
